<compile_context>
chip_gen: v7x
topology: tpu7x:2x2x1
jax: 0.10.0
libtpu: 0.0.40
codegen_flags: <defaults>
</compile_context>

<pallas_src>
import math

import jax
import jax.numpy as jnp
from jax.experimental import pallas as pl
from jax.experimental.pallas import tpu as pltpu


def _layer_scale_kernel(x_ref, gamma_ref, o_ref):
    # x_ref:     [rows_tile, lane_dim]  (VMEM)
    # gamma_ref: [1, lane_dim]          (VMEM, constant index_map -> resident)
    # o_ref:     [rows_tile, lane_dim]
    x = x_ref[...].astype(gamma_ref.dtype)          # compute at promoted dtype
    o_ref[...] = (x * gamma_ref[...]).astype(o_ref.dtype)


def _round_up(n: int, m: int) -> int:
    return ((n + m - 1) // m) * m


def layer_scale(
    x: jax.Array,
    gamma: jax.Array,
    *,
    out_dtype=None,
    target_block_bytes: int | None = None,
    donate_x: bool = False,
) -> jax.Array:
    """Applies y = x * gamma with gamma (dim,) broadcast along x's last axis."""
    orig_shape = x.shape
    dim = orig_shape[-1]
    assert gamma.shape == (dim,), "gamma must have shape (dim,)"

    # Torch promotion semantics by default (e.g. bf16 x * f32 gamma -> f32);
    # callers may override out_dtype (e.g. store bf16) to halve write traffic.
    compute_dtype = jnp.result_type(x.dtype, gamma.dtype)
    if out_dtype is None:
        out_dtype = compute_dtype
    out_dtype = jnp.dtype(out_dtype)

    # --- Generation-aware resource targets. ---
    try:
        vmem_cap = int(pltpu.get_tpu_info().vmem_capacity_bytes)
    except Exception:  # pragma: no cover - be conservative if query fails
        vmem_cap = 64 * 1024 * 1024
    if target_block_bytes is None:
        # v7x: 64 MiB VMEM/TC -> 4 MiB blocks; v5e/v6e: 128 MiB -> 8 MiB blocks.
        target_block_bytes = (4 << 20) if vmem_cap <= (64 << 20) else (8 << 20)

    # Flatten all leading axes into a single row axis.
    x2d = x.reshape(-1, dim)
    n_rows = x2d.shape[0]

    # --- Lane-dense folding, only when it is a free reshape (no padding). ---
    if dim % 128 == 0:
        k = 1
    else:
        k = 128 // math.gcd(dim, 128)
        if k > 1 and n_rows % k != 0:
            k = 1  # tolerate masked stores instead of a full-array pad copy
    lane_dim = k * dim
    if k > 1:
        xf = x2d.reshape(-1, lane_dim)
        gamma_lane = jnp.tile(gamma.astype(compute_dtype), (k,)).reshape(1, lane_dim)
    else:
        xf = x2d
        gamma_lane = gamma.astype(compute_dtype).reshape(1, lane_dim)
    nf_rows = xf.shape[0]

    # --- Row tile: VMEM-budgeted, sublane-aligned for the input dtype. ---
    in_itemsize = jnp.dtype(x.dtype).itemsize
    out_itemsize = out_dtype.itemsize
    gamma_itemsize = jnp.dtype(compute_dtype).itemsize
    itemsize = max(in_itemsize, out_itemsize)
    sublane = max(8, 32 // in_itemsize)  # 8 for f32, 16 for bf16, 32 for int8

    rows_tile = max(sublane, target_block_bytes // (lane_dim * itemsize))
    rows_tile = (rows_tile // sublane) * sublane
    rows_tile = min(rows_tile, _round_up(nf_rows, sublane))
    rows_tile = max(rows_tile, sublane)

    # Multi-block tensors: guarantee >= ~4 grid steps so both v7x TensorCores
    # get work and the DMA pipeline has something to overlap.
    if nf_rows > rows_tile and pl.cdiv(nf_rows, rows_tile) < 4:
        rows_tile = max(sublane, _round_up(pl.cdiv(nf_rows, 4), sublane))

    grid = (pl.cdiv(nf_rows, rows_tile),)  # ragged last block handled by Pallas

    # --- VMEM limit: double-buffered in+out blocks + resident gamma + headroom.
    in_block = rows_tile * lane_dim * in_itemsize
    out_block = rows_tile * lane_dim * out_itemsize
    gamma_bytes = lane_dim * gamma_itemsize
    vmem_need = 2 * (in_block + out_block) + 2 * gamma_bytes
    vmem_limit = int(vmem_need * 1.25) + (2 << 20)
    vmem_limit = max(vmem_limit, vmem_need + (1 << 20))
    vmem_limit = min(vmem_limit, (vmem_cap * 3) // 4)  # leave Mosaic headroom

    # Advisory cost for XLA's scheduler (this call is pure HBM bandwidth).
    n_elems = nf_rows * lane_dim
    cost = pl.CostEstimate(
        flops=n_elems,
        transcendentals=0,
        bytes_accessed=n_elems * (in_itemsize + out_itemsize) + gamma_bytes,
    )

    io_aliases = {}
    if donate_x and out_dtype == jnp.dtype(x.dtype):
        io_aliases = {0: 0}  # reuse x's HBM buffer when the caller donates it

    out2d = pl.pallas_call(
        _layer_scale_kernel,
        out_shape=jax.ShapeDtypeStruct((nf_rows, lane_dim), out_dtype),
        grid_spec=pltpu.PrefetchScalarGridSpec(
            num_scalar_prefetch=0,
            grid=grid,
            in_specs=[
                pl.BlockSpec((rows_tile, lane_dim), lambda i: (i, 0)),
                pl.BlockSpec((1, lane_dim), lambda i: (0, 0)),
            ],
            out_specs=pl.BlockSpec((rows_tile, lane_dim), lambda i: (i, 0)),
        ),
        compiler_params=pltpu.CompilerParams(
            dimension_semantics=("parallel",),
            vmem_limit_bytes=vmem_limit,
        ),
        cost_estimate=cost,
        input_output_aliases=io_aliases,
    )(xf, gamma_lane)

    # nf_rows * lane_dim == prod(orig_shape) (folding only when exact), so this
    # is a free contiguous reshape — no slicing, no extra HBM pass.
    return out2d.reshape(orig_shape)


if __name__ == "__main__":
    init_values = 1e-05

    # Check 1: dim=32 — lane-dense fold path (4 rows folded -> lane_dim=128).
    dim = 32
    gamma = init_values * jnp.ones((dim,), dtype=jnp.float32)
    x = jax.random.normal(jax.random.PRNGKey(0), (2, 8, dim), dtype=jnp.float32)
    y = layer_scale(x, gamma)
    jax.block_until_ready(y)
    y_ref = x * gamma
    assert y.shape == x.shape and y.dtype == y_ref.dtype
    assert jnp.allclose(y, y_ref, atol=1e-6), "mismatch vs reference (dim=32)"

    # Check 2: dim=256 — lane-aligned path (dim % 128 == 0).
    dim2 = 256
    gamma2 = init_values * jnp.ones((dim2,), dtype=jnp.float32)
    x2 = jax.random.normal(jax.random.PRNGKey(0), (2, 8, dim2), dtype=jnp.float32)
    y2 = layer_scale(x2, gamma2)
    jax.block_until_ready(y2)
    assert jnp.allclose(y2, x2 * gamma2, atol=1e-6), "mismatch vs reference (dim=256)"

    # Check 3: dim=48 with rows not divisible by the fold factor — exercises
    # the no-fold path with a ragged (masked) last block.
    dim3 = 48
    gamma3 = init_values * jnp.ones((dim3,), dtype=jnp.float32)
    x3 = jax.random.normal(jax.random.PRNGKey(0), (3, 5, dim3), dtype=jnp.float32)
    y3 = layer_scale(x3, gamma3)
    jax.block_until_ready(y3)
    assert jnp.allclose(y3, x3 * gamma3, atol=1e-6), "mismatch vs reference (dim=48)"

    print("KERNEL_OK")
</pallas_src>

<mosaic_0001>
module attributes {stable_mosaic.version = 11 : i64} {
  func.func @_layer_scale_kernel(%arg0: i32, %arg1: memref<8x128xf32, #tpu.memory_space<vmem>>, %arg2: memref<1x128xf32, #tpu.memory_space<vmem>>, %arg3: memref<8x128xf32, #tpu.memory_space<vmem>>) attributes {dimension_semantics = [#tpu.dimension_semantics<parallel>], iteration_bounds = array<i64: 1>, scalar_prefetch = 0 : i64, scratch_operands = 0 : i64, tpu.core_type = #tpu.core_type<tc>, window_params = [{transform_indices = @transform_0, window_bounds = array<i64: 8, 128>}, {pipeline_mode = #tpu.pipeline_mode<synchronous>, transform_indices = @transform_1, window_bounds = array<i64: 1, 128>}, {transform_indices = @transform_2, window_bounds = array<i64: 8, 128>}]} {
    %c0 = arith.constant 0 : index
    %c0_0 = arith.constant 0 : index
    %0 = vector.load %arg1[%c0, %c0_0] : memref<8x128xf32, #tpu.memory_space<vmem>>, vector<8x128xf32>
    %c0_1 = arith.constant 0 : index
    %c0_2 = arith.constant 0 : index
    %1 = vector.load %arg2[%c0_1, %c0_2] : memref<1x128xf32, #tpu.memory_space<vmem>>, vector<1x128xf32>
    %2 = vector.broadcast %1 : vector<1x128xf32> to vector<8x128xf32>
    %3 = arith.mulf %0, %2 : vector<8x128xf32>
    %c0_3 = arith.constant 0 : index
    %c0_4 = arith.constant 0 : index
    %4 = vector.load %arg3[%c0_3, %c0_4] : memref<8x128xf32, #tpu.memory_space<vmem>>, vector<8x128xf32>
    tpu.vector_store %arg3[%c0_3, %c0_4], %3 {strides = array<i32>} : memref<8x128xf32, #tpu.memory_space<vmem>>, vector<8x128xf32>,
    return
  }
  func.func @transform_0(%arg0: i32) -> (i32, i32) {
    %c0_i32 = arith.constant 0 : i32
    %c0_i32_0 = arith.constant 0 : i32
    return %arg0, %c0_i32 : i32, i32
  }
  func.func @transform_1(%arg0: i32) -> (i32, i32) {
    %c0_i32 = arith.constant 0 : i32
    %c0_i32_0 = arith.constant 0 : i32
    %c0_i32_1 = arith.constant 0 : i32
    return %c0_i32, %c0_i32_0 : i32, i32
  }
  func.func @transform_2(%arg0: i32) -> (i32, i32) {
    %c0_i32 = arith.constant 0 : i32
    %c0_i32_0 = arith.constant 0 : i32
    return %arg0, %c0_i32 : i32, i32
  }
}

</mosaic_0001>

<bundles_post_ra>
// kernel: tpu_custom_call.1
= control target key start
LH: loop header
LB: loop body
LE: loop exit
PB: predicated region body
PF: predicated region fallthrough
CT: control target
= control target key end

     0   :  { %7 = vsyncpa [#allocation3], 0  ;;  %s152_s0 = inlined_call_operand.hbm [shape: f32[4,128], index: 0, kind: input, shape index: {}]   ;;  %s153_s1 = inlined_call_operand.vmem [shape: f32[1,128], index: 1, kind: input, shape index: {}]   ;;  %s154_s2 = inlined_call_operand.hbm [shape: f32[4,128], index: 2, kind: output, shape index: {}]  }
   0x1   :  { %8 = vsyncpa [#allocation4], 0 }
   0x2   :  { %13 = vsyncadd [#allocation3], 64  ;;  %s106_s9 = smov [#allocation2]   ;;  %s58_s13 = scalar_lea.hbm %s152_s0, 64 }
   0x3   :  { %s14_s10 = sshll.u32 %s106_s9, 4  ;;  %p59_p0 = scmp.ne.s32.totalorder %s152_s0, %s58_s13  ;;  %s15_s10 = int_to_ptr.vmem [resolvable:$true] %s14_s10 }
   0x4   :  { %p62_p1 = scmp.lt.u32.totalorder %s58_s13, %s152_s0 }
   0x6   :  { %p64_p2 = pnand %p62_p1, %p59_p0 }
   0x8   :  { %67 = shalt.err (!%p64_p2)
}
   0x9   :  { %s68_s18 = scalar_lea.vmem %s15_s10, 64  ;;  %s72_s19 = scalar_lea.vmem %s15_s10, 128 }
   0xa   :  { %p69_p3 = scmp.ne.s32.totalorder %s15_s10, %s68_s18  ;;  %p73_p4 = scmp.lt.s32.totalorder %s15_s10, %s15_s10 }
   0xb   :  { %p74_p5 = scmp.lt.s32.totalorder %s72_s19, %s68_s18 }
   0xd   :  { %p75_p6 = por %p74_p5, %p73_p4 }
   0xf   :  { %p76_p7 = pnand %p75_p6, %p69_p3 }
  0x11   :  { %79 = shalt.err (!%p76_p7)
}
  0x12   :  { %s107_s20 = smov 64   ;;  %s108_s21 = smov 4  }
  0x13   :  { %20 = dma.hbm_to_vmem [thread:$0]  %s152_s0, 64, %s15_s10, [#allocation3], %s107_s20, %s107_s20, %s108_s21  }
  0x14   :  { %102 = dma.done.wait [#allocation3], 128  }
  0x15   :  { %103 = vsyncadd [#allocation3], 4294967168  ;;  %v26_v0 = vld [vmem:[#allocation2] sm:$0xff] }
  0x16   :  { %v53_v1 = vld [vmem:[%s153_s1] ss:$0 sm:$0xff] }
  0x17   :  { %v34_v2 = vmul.f32 %v53_v1, %v26_v0 }
  0x19   :  { %35 = vst [vmem:[#allocation5] sm:$0xff] %v34_v2 }
  0x1a   :  { %40 = vsyncadd [#allocation4], 64  ;;  %s109_s26 = smov [#allocation5]  }
  0x1b   :  { %s41_s27 = sshll.u32 %s109_s26, 4  ;;  %s42_s27 = int_to_ptr.vmem [resolvable:$true] %s41_s27 }
  0x1c   :  { %s80_s28 = scalar_lea.vmem %s42_s27, 64  ;;  %s84_s29 = scalar_lea.vmem %s42_s27, 128 }
  0x1d   :  { %p81_p8 = scmp.ne.s32.totalorder %s42_s27, %s80_s28  ;;  %p85_p9 = scmp.lt.s32.totalorder %s42_s27, %s42_s27 }
  0x1e   :  { %p86_p10 = scmp.lt.s32.totalorder %s84_s29, %s80_s28 }
  0x20   :  { %p87_p11 = por %p86_p10, %p85_p9 }
  0x22   :  { %p88_p12 = pnand %p87_p11, %p81_p8 }
  0x24   :  { %91 = shalt.err (!%p88_p12)
}
  0x25   :  { %s92_s3 = scalar_lea.hbm %s154_s2, 64 }
  0x26   :  { %p93_p13 = scmp.ne.s32.totalorder %s154_s2, %s92_s3  ;;  %p96_p0 = scmp.lt.u32.totalorder %s92_s3, %s154_s2 }
  0x28   :  { %p98_p1 = pnand %p96_p0, %p93_p13 }
  0x2a   :  { %101 = shalt.err (!%p98_p1)
}
  0x2b   :  { %47 = dma.vmem_to_hbm [thread:$0]  %s42_s27, 64, %s154_s2, [#allocation4], %s107_s20, %s107_s20, %s108_s21  }
  0x2c   :  { %104 = dma.done.wait [#allocation4], 128  }
  0x2d   :  { %105 = vsyncadd [#allocation4], 4294967168 }
  0x2e   :  { %51 = vsyncpa [#allocation3], 1 }
  0x2f   :  { %52 = vsyncpa [#allocation4], 1 }

</bundles_post_ra>
